<compile_context>
chip_gen: v7x
topology: tpu7x:2x2x1
jax: 0.10.0
libtpu: 0.0.40
codegen_flags: <defaults>
</compile_context>

<pallas_src>
import functools

import jax
import jax.numpy as jnp
from jax import lax
from jax.experimental import pallas as pl
from jax.experimental.pallas import tpu as pltpu

LANES = 128
MAX_BLOCK_ROWS = 4096   # f32: 2 MiB/input block; x2 inputs x2 buffers = 8 MiB VMEM


def _ceil_div(a, b):
    return -(-a // b)


def _round_up(a, m):
    return _ceil_div(a, m) * m


def _sse_partial_kernel(x_ref, y_ref, o_ref, *, block_rows, tiles_per_split,
                        rows, any_overshoot):
    """Accumulate a per-split (8,128) partial sum of squared errors into o_ref."""
    s = pl.program_id(0)   # parallel split (one per TensorCore on v7x)
    i = pl.program_id(1)   # sequential tile within the split

    @pl.when(i == 0)
    def _():
        o_ref[...] = jnp.zeros_like(o_ref)

    # Upcast per tile on the VPU; inputs stream HBM->VMEM in their native dtype.
    d = x_ref[...].astype(jnp.float32) - y_ref[...].astype(jnp.float32)

    def accumulate(dd):
        sq = dd * dd
        # (block_rows,128) -> (block_rows//8, 8, 128), reduce the leading axis:
        # pure elementwise vreg adds on the VPU; the cross-lane reduction is
        # deferred to the tiny wrapper-side combine.
        o_ref[...] += sq.reshape(block_rows // 8, 8, LANES).sum(axis=0)

    if not any_overshoot:
        # Common case: the grid tiles the slab exactly; no masking anywhere.
        accumulate(d)
    else:
        row_start = (s * tiles_per_split + i) * block_rows
        is_boundary = row_start + block_rows > rows

        @pl.when(jnp.logical_not(is_boundary))
        def _():
            accumulate(d)

        @pl.when(is_boundary)
        def _():
            # Only the boundary tile pays for the iota/compare/select.  Masking
            # d BEFORE squaring also squashes any NaN/Inf garbage that may sit
            # in the DMA-overshoot region of the block.
            row_idx = lax.broadcasted_iota(jnp.int32, (block_rows, LANES), 0)
            accumulate(jnp.where(row_start + row_idx < rows, d, 0.0))


def rmse_loss(x, y, reduction="mean"):
    """sqrt(MSELoss(reduction)(x, y)) computed with a Pallas TPU kernel."""
    assert x.shape == y.shape, "X and Y must have identical shapes"
    assert reduction in ("mean", "sum")
    # TODO(synk): reduction='none' returns an elementwise tensor; only the
    # scalar reductions ('mean'/'sum') are implemented here.

    n_elems = int(x.size)
    xf = jnp.ravel(x)   # reshape of contiguous data is free; keep native dtype
    yf = jnp.ravel(y)

    if n_elems < 8 * LANES:
        # Tiny input: a kernel launch is pure overhead and packed dtypes would
        # fall below the native tile; plain jnp is both safer and faster here.
        d = xf.astype(jnp.float32) - yf.astype(jnp.float32)
        total = jnp.sum(d * d, dtype=jnp.float32)
    else:
        lane_rows = n_elems // LANES
        tail = n_elems - lane_rows * LANES

        # No wrapper-side jnp.pad copy: the lane-aligned prefix streams through
        # the kernel; the (<128-element) lane tail is reduced with a tiny jnp op.
        tail_sse = jnp.float32(0.0)
        if tail:
            dt = (xf[lane_rows * LANES:].astype(jnp.float32)
                  - yf[lane_rows * LANES:].astype(jnp.float32))
            tail_sse = jnp.sum(dt * dt, dtype=jnp.float32)
            xf = xf[: lane_rows * LANES]
            yf = yf[: lane_rows * LANES]

        rows = lane_rows
        x2d = xf.reshape(rows, LANES)
        y2d = yf.reshape(rows, LANES)

        # Sub-32-bit dtypes pack along sublanes: keep block rows a multiple of
        # the packing factor (8 f32 / 16 bf16 / 32 int8-fp8) when possible.
        min_itemsize = min(jnp.dtype(x.dtype).itemsize, jnp.dtype(y.dtype).itemsize)
        unit = max(8, 32 // max(1, int(min_itemsize)))
        if rows < unit:
            unit = 8   # tiny packed input: accept a degraded (sub-native) tile

        # Largest block (multiple of `unit`, <= rows, <= MAX_BLOCK_ROWS) so each
        # grid step's DMA is big enough to amortize the ~0.35 us step overhead.
        cap = min((MAX_BLOCK_ROWS // unit) * unit, (rows // unit) * unit)
        min_tiles = _ceil_div(rows, cap)
        if min_tiles >= 2:
            # Two evenly sized "parallel" splits -> both TensorCores stream on
            # v7x; force an even tile count so neither split gets a wasted tile.
            num_splits = 2
            tiles_total = min_tiles + (min_tiles % 2)
        else:
            num_splits = 1
            tiles_total = 1
        tiles_per_split = tiles_total // num_splits
        block_rows = min(cap, _round_up(_ceil_div(rows, tiles_total), unit))
        any_overshoot = tiles_total * block_rows != rows
        last_block = _ceil_div(rows, block_rows) - 1

        if any_overshoot:
            def in_index_map(s, i):
                # Safety net: never point a DMA at a fully out-of-range block
                # (its contribution is masked to zero in-kernel anyway).
                return (jnp.minimum(s * tiles_per_split + i, last_block), 0)
        else:
            def in_index_map(s, i):
                return (s * tiles_per_split + i, 0)

        kernel = functools.partial(
            _sse_partial_kernel,
            block_rows=block_rows,
            tiles_per_split=tiles_per_split,
            rows=rows,
            any_overshoot=any_overshoot,
        )

        bytes_accessed = rows * LANES * (int(jnp.dtype(x.dtype).itemsize)
                                         + int(jnp.dtype(y.dtype).itemsize))
        bytes_accessed += num_splits * 8 * LANES * 4

        partials = pl.pallas_call(
            kernel,
            out_shape=jax.ShapeDtypeStruct((num_splits * 8, LANES), jnp.float32),
            grid_spec=pltpu.PrefetchScalarGridSpec(
                num_scalar_prefetch=0,
                grid=(num_splits, tiles_per_split),
                in_specs=[
                    pl.BlockSpec((block_rows, LANES), in_index_map),
                    pl.BlockSpec((block_rows, LANES), in_index_map),
                ],
                out_specs=pl.BlockSpec((8, LANES), lambda s, i: (s, 0)),
            ),
            compiler_params=pltpu.CompilerParams(
                dimension_semantics=("parallel", "arbitrary"),
            ),
            cost_estimate=pl.CostEstimate(
                flops=3 * n_elems,
                transcendentals=0,
                bytes_accessed=int(bytes_accessed),
            ),
        )(x2d, y2d)

        total = jnp.sum(partials, dtype=jnp.float32) + tail_sse

    if reduction == "mean":
        total = total / jnp.float32(n_elems)
    return jnp.sqrt(total)


if __name__ == "__main__":
    key = jax.random.PRNGKey(0)
    kx, ky, ka, kb, kc, kd = jax.random.split(key, 6)

    # 1) Primary check: small NCHW regression output, reduction='mean'.
    x = jax.random.normal(kx, (2, 4, 16, 16), dtype=jnp.float32)
    y = jax.random.normal(ky, (2, 4, 16, 16), dtype=jnp.float32)
    loss = rmse_loss(x, y, reduction="mean")
    jax.block_until_ready(loss)
    ref = jnp.sqrt(jnp.mean((x - y) ** 2))
    assert jnp.allclose(loss, ref, rtol=1e-5, atol=1e-6), (loss, ref)

    # 2) Larger slab: exercises the two balanced parallel splits and a boundary
    #    tile whose row overshoot is masked in-kernel, reduction='sum'.
    a = jax.random.normal(ka, (25, 4, 101, 128), dtype=jnp.float32)
    b = jax.random.normal(kb, (25, 4, 101, 128), dtype=jnp.float32)
    loss2 = rmse_loss(a, b, reduction="sum")
    jax.block_until_ready(loss2)
    ref2 = jnp.sqrt(jnp.sum((a - b) ** 2))
    assert jnp.allclose(loss2, ref2, rtol=1e-4, atol=1e-4), (loss2, ref2)

    # 3) Lane-unaligned element count: exercises the no-pad prefix/tail path.
    c = jax.random.normal(kc, (6, 10, 173), dtype=jnp.float32)
    d = jax.random.normal(kd, (6, 10, 173), dtype=jnp.float32)
    loss3 = rmse_loss(c, d, reduction="mean")
    jax.block_until_ready(loss3)
    ref3 = jnp.sqrt(jnp.mean((c - d) ** 2))
    assert jnp.allclose(loss3, ref3, rtol=1e-5, atol=1e-6), (loss3, ref3)

    # 4) bf16 inputs: exercises the (16,128) packed-tile block sizing.
    xb = x.astype(jnp.bfloat16)
    yb = y.astype(jnp.bfloat16)
    loss4 = rmse_loss(xb, yb, reduction="mean")
    jax.block_until_ready(loss4)
    ref4 = jnp.sqrt(jnp.mean((xb.astype(jnp.float32) - yb.astype(jnp.float32)) ** 2))
    assert jnp.allclose(loss4, ref4, rtol=1e-5, atol=1e-6), (loss4, ref4)

    print("KERNEL_OK")
</pallas_src>

<mosaic_0001>
module attributes {stable_mosaic.version = 11 : i64} {
  func.func @_sse_partial_kernel(%arg0: i32, %arg1: i32, %arg2: memref<16x128xf32, #tpu.memory_space<vmem>>, %arg3: memref<16x128xf32, #tpu.memory_space<vmem>>, %arg4: memref<8x128xf32, #tpu.memory_space<vmem>>) attributes {dimension_semantics = [#tpu.dimension_semantics<parallel>, #tpu.dimension_semantics<arbitrary>], iteration_bounds = array<i64: 1, 1>, scalar_prefetch = 0 : i64, scratch_operands = 0 : i64, tpu.core_type = #tpu.core_type<tc>, window_params = [{transform_indices = @transform_0, window_bounds = array<i64: 16, 128>}, {transform_indices = @transform_1, window_bounds = array<i64: 16, 128>}, {transform_indices = @transform_2, window_bounds = array<i64: 8, 128>}]} {
    %c0_i32 = arith.constant 0 : i32
    %0 = arith.cmpi eq, %arg1, %c0_i32 : i32
    %1 = arith.extui %0 : i1 to i32
    %c0_i32_0 = arith.constant 0 : i32
    %2 = arith.cmpi ne, %1, %c0_i32_0 : i32
    scf.if %2 {
      %cst_8 = arith.constant 0.000000e+00 : f32
      %12 = vector.broadcast %cst_8 : f32 to vector<8x128xf32>
      %c0_9 = arith.constant 0 : index
      %c0_10 = arith.constant 0 : index
      %13 = vector.load %arg4[%c0_9, %c0_10] : memref<8x128xf32, #tpu.memory_space<vmem>>, vector<8x128xf32>
      tpu.vector_store %arg4[%c0_9, %c0_10], %12 {strides = array<i32>} : memref<8x128xf32, #tpu.memory_space<vmem>>, vector<8x128xf32>,
    } else {
    }
    %c0 = arith.constant 0 : index
    %c0_1 = arith.constant 0 : index
    %3 = vector.load %arg2[%c0, %c0_1] : memref<16x128xf32, #tpu.memory_space<vmem>>, vector<16x128xf32>
    %c0_2 = arith.constant 0 : index
    %c0_3 = arith.constant 0 : index
    %4 = vector.load %arg3[%c0_2, %c0_3] : memref<16x128xf32, #tpu.memory_space<vmem>>, vector<16x128xf32>
    %5 = arith.subf %3, %4 : vector<16x128xf32>
    %6 = arith.mulf %5, %5 : vector<16x128xf32>
    %c0_4 = arith.constant 0 : index
    %c0_5 = arith.constant 0 : index
    %7 = vector.load %arg4[%c0_4, %c0_5] : memref<8x128xf32, #tpu.memory_space<vmem>>, vector<8x128xf32>
    %8 = vector.shape_cast %6 : vector<16x128xf32> to vector<2x8x128xf32>
    %cst = arith.constant dense<0.000000e+00> : vector<8x128xf32>
    %9 = vector.multi_reduction <add>, %8, %cst [0] : vector<2x8x128xf32> to vector<8x128xf32>
    %10 = arith.addf %7, %9 : vector<8x128xf32>
    %c0_6 = arith.constant 0 : index
    %c0_7 = arith.constant 0 : index
    %11 = vector.load %arg4[%c0_6, %c0_7] : memref<8x128xf32, #tpu.memory_space<vmem>>, vector<8x128xf32>
    tpu.vector_store %arg4[%c0_6, %c0_7], %10 {strides = array<i32>} : memref<8x128xf32, #tpu.memory_space<vmem>>, vector<8x128xf32>,
    return
  }
  func.func @transform_0(%arg0: i32, %arg1: i32) -> (i32, i32) {
    %c1_i32 = arith.constant 1 : i32
    %0 = arith.muli %arg0, %c1_i32 : i32
    %1 = arith.addi %0, %arg1 : i32
    %c0_i32 = arith.constant 0 : i32
    %c0_i32_0 = arith.constant 0 : i32
    return %1, %c0_i32 : i32, i32
  }
  func.func @transform_1(%arg0: i32, %arg1: i32) -> (i32, i32) {
    %c1_i32 = arith.constant 1 : i32
    %0 = arith.muli %arg0, %c1_i32 : i32
    %1 = arith.addi %0, %arg1 : i32
    %c0_i32 = arith.constant 0 : i32
    %c0_i32_0 = arith.constant 0 : i32
    return %1, %c0_i32 : i32, i32
  }
  func.func @transform_2(%arg0: i32, %arg1: i32) -> (i32, i32) {
    %c0_i32 = arith.constant 0 : i32
    %c0_i32_0 = arith.constant 0 : i32
    return %arg0, %c0_i32 : i32, i32
  }
}

</mosaic_0001>

<bundles_post_ra>
// kernel: tpu_custom_call.1
= control target key start
LH: loop header
LB: loop body
LE: loop exit
PB: predicated region body
PF: predicated region fallthrough
CT: control target
= control target key end

     0   :  { %7 = vsyncpa [#allocation3], 0  ;;  %s219_s0 = inlined_call_operand.hbm [shape: f32[16,128], index: 0, kind: input, shape index: {}]   ;;  %s220_s1 = inlined_call_operand.hbm [shape: f32[16,128], index: 1, kind: input, shape index: {}]   ;;  %s221_s2 = inlined_call_operand.hbm [shape: f32[8,128], index: 2, kind: output, shape index: {}]  }
   0x1   :  { %8 = vsyncpa [#allocation6], 0 }
   0x2   :  { %9 = vsyncpa [#allocation4], 0  ;;  %s163_s9 = smov [#allocation2]   ;;  %s91_s13 = scalar_lea.hbm %s219_s0, 256 }
   0x3   :  { %s19_s10 = sshll.u32 %s163_s9, 4  ;;  %p92_p0 = scmp.ne.s32.totalorder %s219_s0, %s91_s13  ;;  %s20_s10 = int_to_ptr.vmem [resolvable:$true] %s19_s10 }
   0x4   :  { %p95_p1 = scmp.lt.u32.totalorder %s91_s13, %s219_s0 }
   0x6   :  { %p97_p2 = pnand %p95_p1, %p92_p0 }
   0x8   :  { %100 = shalt.err (!%p97_p2)
}
   0x9   :  { %s101_s18 = scalar_lea.vmem %s20_s10, 256  ;;  %p106_p4 = scmp.lt.s32.totalorder %s20_s10, %s20_s10 }
   0xa   :  { %p102_p3 = scmp.ne.s32.totalorder %s20_s10, %s101_s18  ;;  %p107_p5 = scmp.lt.s32.totalorder %s101_s18, %s101_s18 }
   0xc   :  { %p108_p6 = por %p107_p5, %p106_p4 }
   0xe   :  { %p109_p7 = pnand %p108_p6, %p102_p3 }
  0x10   :  { %112 = shalt.err (!%p109_p7)
}
  0x11   :  { %s164_s19 = smov 128   ;;  %s165_s20 = smov 8  }
  0x12   :  { %25 = dma.hbm_to_vmem [thread:$0]  %s219_s0, 256, %s20_s10, [#allocation3], %s164_s19, %s164_s19, %s165_s20  }
  0x13   :  { %s166_s23 = smov [#allocation5]   ;;  %s113_s27 = scalar_lea.hbm %s220_s1, 256 }
  0x14   :  { %s35_s24 = sshll.u32 %s166_s23, 4  ;;  %p114_p8 = scmp.ne.s32.totalorder %s220_s1, %s113_s27  ;;  %s36_s24 = int_to_ptr.vmem [resolvable:$true] %s35_s24 }
  0x15   :  { %p117_p9 = scmp.lt.u32.totalorder %s113_s27, %s220_s1 }
  0x17   :  { %p119_p10 = pnand %p117_p9, %p114_p8 }
  0x19   :  { %122 = shalt.err (!%p119_p10)
}
  0x1a   :  { %s123_s4 = scalar_lea.vmem %s36_s24, 256  ;;  %p128_p12 = scmp.lt.s32.totalorder %s36_s24, %s36_s24 }
  0x1b   :  { %p124_p11 = scmp.ne.s32.totalorder %s36_s24, %s123_s4  ;;  %p129_p13 = scmp.lt.s32.totalorder %s123_s4, %s123_s4 }
  0x1d   :  { %p130_p0 = por %p129_p13, %p128_p12 }
  0x1f   :  { %p131_p1 = pnand %p130_p0, %p124_p11 }
  0x21   :  { %134 = shalt.err (!%p131_p1)
}
  0x22   :  { %41 = dma.hbm_to_vmem [thread:$0]  %s220_s1, 256, %s36_s24, [#allocation6], %s164_s19, %s164_s19, %s165_s20  }
  0x23   :  { %157 = dma.done.wait [#allocation3], 256  }
  0x24   :  { %158 = vsyncadd [#allocation3], 4294967040 }
  0x25   :  { %159 = dma.done.wait [#allocation6], 256  }
  0x26   :  { %160 = vsyncadd [#allocation6], 4294967040  ;;  %v57_v0 = vld [vmem:[#allocation2] sm:$0xff]  ;;  %v58_v1 = vld [vmem:[#allocation2 + $0x8] sm:$0xff]  ;;  %s167_s6 = smov [#allocation7]  }
  0x27   :  { %v59_v2 = vld [vmem:[#allocation5] sm:$0xff]  ;;  %v60_v3 = vld [vmem:[#allocation5 + $0x8] sm:$0xff]  ;;  %s75_s7 = sshll.u32 %s167_s6, 4  ;;  %s76_s7 = int_to_ptr.vmem [resolvable:$true] %s75_s7 }
  0x28   :  { %v61_v4 = vsub.f32 %v57_v0, %v59_v2  ;;  %v62_v5 = vsub.f32 %v58_v1, %v60_v3  ;;  %s135_s8 = scalar_lea.vmem %s76_s7, 128  ;;  %p140_p3 = scmp.lt.s32.totalorder %s76_s7, %s76_s7 }
  0x29   :  { %p136_p2 = scmp.ne.s32.totalorder %s76_s7, %s135_s8  ;;  %p141_p4 = scmp.lt.s32.totalorder %s135_s8, %s135_s8 }
  0x2a   :  { %v63_v6 = vmul.f32 %v61_v4, %v61_v4  ;;  %v64_v7 = vmul.f32 %v62_v5, %v62_v5 }
  0x2b   :  { %p142_p5 = por %p141_p4, %p140_p3 }
  0x2c   :  { %v66_v8 = vadd.f32 %v64_v7, %v63_v6 }
  0x2d   :  { %p143_p6 = pnand %p142_p5, %p136_p2 }
  0x2e   :  { %68 = vst [vmem:[#allocation7] sm:$0xff] %v66_v8 }
  0x2f   :  { %146 = shalt.err (!%p143_p6)
}
  0x30   :  { %s147_s10 = scalar_lea.hbm %s221_s2, 128 }
  0x31   :  { %p148_p7 = scmp.ne.s32.totalorder %s221_s2, %s147_s10  ;;  %p151_p8 = scmp.lt.u32.totalorder %s147_s10, %s221_s2 }
  0x33   :  { %p153_p9 = pnand %p151_p8, %p148_p7 }
  0x35   :  { %156 = shalt.err (!%p153_p9)
}
  0x36   :  { %78 = dma.vmem_to_hbm [thread:$0]  %s76_s7, 128, %s221_s2, [#allocation4]  }
  0x37   :  { %161 = dma.done.wait [#allocation4], 128  }
  0x38   :  { %162 = vsyncadd [#allocation4], 4294967168 }
  0x39   :  { %82 = vsyncpa [#allocation3], 1 }
  0x3a   :  { %83 = vsyncpa [#allocation6], 1 }
  0x3b   :  { %84 = vsyncpa [#allocation4], 1 }

</bundles_post_ra>
